<compile_context>
chip_gen: v7x
topology: tpu7x:2x2x1
jax: 0.10.0
libtpu: 0.0.40
codegen_flags: <defaults>
</compile_context>

<pallas_src>
import functools

import jax
import jax.numpy as jnp
from jax.experimental import pallas as pl
from jax.experimental.pallas import tpu as pltpu


# --------------------------------------------------------------------------
# Fused kernel: core MLP -> (mu, std) -> all S reparameterized samples,
# one batch tile per grid step.  Everything stays 2-D and lane-aligned.
# --------------------------------------------------------------------------
def _make_fused_kernel(num_samples: int, latent_dim: int):
    S, Z = num_samples, latent_dim

    def kernel(x_ref, w1_ref, b1_ref, wmu_ref, bmu_ref, wlv_ref, blv_ref,
               eps_ref, z_ref):
        x = x_ref[...]                                                   # [TB, D]
        h = jnp.dot(x, w1_ref[...], preferred_element_type=jnp.float32)  # [TB, H]
        h = jnp.maximum(h + b1_ref[...], 0.0)                            # ReLU
        mu = jnp.dot(h, wmu_ref[...],
                     preferred_element_type=jnp.float32) + bmu_ref[...]  # [TB, Z]
        # std computed ONCE per batch tile (hoisted out of the sample loop).
        std = jnp.exp(0.5 * (jnp.dot(h, wlv_ref[...],
                                     preferred_element_type=jnp.float32)
                             + blv_ref[...]))                            # [TB, Z]
        # All S samples in this step; eps/z are lane-folded [TB, S*Z] so each
        # sample occupies a static, Z-aligned lane slice.  Short static unroll.
        for s in range(S):
            sl = slice(s * Z, (s + 1) * Z)
            z_ref[:, sl] = mu + std * eps_ref[:, sl]

    return kernel


# --------------------------------------------------------------------------
# Wrapper: x [B, D], eps [B, S, Z]  ->  z [B, S, Z]
# --------------------------------------------------------------------------
@functools.partial(jax.jit, static_argnames=("block_b",))
def gaussian_encoder_forward(x, params, eps, *, block_b=8):
    w1, b1, wmu, bmu, wlv, blv = params
    B, D = x.shape
    H = w1.shape[1]
    Z = wmu.shape[1]
    S = eps.shape[1]

    tb = block_b if (B % block_b == 0) else B
    # Row-major [B,S,Z] -> [B,S*Z] is a free reshape (no transpose, no copy).
    eps2d = eps.reshape(B, S * Z)

    kernel = _make_fused_kernel(S, Z)
    z2d = pl.pallas_call(
        kernel,
        out_shape=jax.ShapeDtypeStruct((B, S * Z), jnp.float32),
        grid=(B // tb,),
        in_specs=[
            pl.BlockSpec((tb, D), lambda i: (i, 0)),        # x      (batch-tiled)
            pl.BlockSpec((D, H), lambda i: (0, 0)),         # w1     (resident)
            pl.BlockSpec((1, H), lambda i: (0, 0)),         # b1
            pl.BlockSpec((H, Z), lambda i: (0, 0)),         # w_mu
            pl.BlockSpec((1, Z), lambda i: (0, 0)),         # b_mu
            pl.BlockSpec((H, Z), lambda i: (0, 0)),         # w_logvar
            pl.BlockSpec((1, Z), lambda i: (0, 0)),         # b_logvar
            pl.BlockSpec((tb, S * Z), lambda i: (i, 0)),    # eps    (batch-tiled)
        ],
        out_specs=pl.BlockSpec((tb, S * Z), lambda i: (i, 0)),
        compiler_params=pltpu.CompilerParams(
            dimension_semantics=("parallel",),        # shard batch tiles on v7x's 2 TCs
            vmem_limit_bytes=32 * 1024 * 1024,        # safe on v5e/v6e/v7x
        ),
    )(x, w1, b1, wmu, bmu, wlv, blv, eps2d)

    # Free row-major reshape back to the PyTorch contract [B, num_samples, Z].
    return z2d.reshape(B, S, Z)


# --------------------------------------------------------------------------
# Pure-JAX reference (correctness check)
# --------------------------------------------------------------------------
def reference_forward(x, params, eps):
    w1, b1, wmu, bmu, wlv, blv = params
    h = jnp.maximum(x @ w1 + b1, 0.0)
    mu = h @ wmu + bmu
    std = jnp.exp(0.5 * (h @ wlv + blv))
    return mu[:, None, :] + std[:, None, :] * eps          # [B, S, Z]


if __name__ == "__main__":
    # Small but tile-friendly demo shapes: Z (lane axis) = 128, batch tile = 8
    # sublanes, two batch tiles so the parallel grid axis is exercised.
    B, D_IN, H, Z, S = 16, 32, 128, 128, 8

    key = jax.random.PRNGKey(0)
    kx, keps, k1, k2, k3 = jax.random.split(key, 5)

    x = jax.random.normal(kx, (B, D_IN), dtype=jnp.float32)
    eps = jax.random.normal(keps, (B, S, Z), dtype=jnp.float32)

    # Deterministic parameter init (Linear-layer shapes of the core MLP).
    w1 = jax.random.normal(k1, (D_IN, H), dtype=jnp.float32) * (1.0 / jnp.sqrt(D_IN))
    b1 = jnp.zeros((1, H), dtype=jnp.float32)
    wmu = jax.random.normal(k2, (H, Z), dtype=jnp.float32) * (1.0 / jnp.sqrt(H))
    bmu = jnp.zeros((1, Z), dtype=jnp.float32)
    wlv = jax.random.normal(k3, (H, Z), dtype=jnp.float32) * (0.1 / jnp.sqrt(H))
    blv = jnp.zeros((1, Z), dtype=jnp.float32)
    params = (w1, b1, wmu, bmu, wlv, blv)

    z = gaussian_encoder_forward(x, params, eps)
    z = jax.block_until_ready(z)

    z_ref = reference_forward(x, params, eps)
    assert z.shape == (B, S, Z), z.shape
    assert jnp.allclose(z, z_ref, atol=2e-3, rtol=2e-3), "mismatch vs reference"

    print("KERNEL_OK")
</pallas_src>

<mosaic_0001>
module attributes {stable_mosaic.version = 11 : i64} {
  func.func @kernel(%arg0: i32, %arg1: memref<8x32xf32, #tpu.memory_space<vmem>>, %arg2: memref<32x128xf32, #tpu.memory_space<vmem>>, %arg3: memref<1x128xf32, #tpu.memory_space<vmem>>, %arg4: memref<128x128xf32, #tpu.memory_space<vmem>>, %arg5: memref<1x128xf32, #tpu.memory_space<vmem>>, %arg6: memref<128x128xf32, #tpu.memory_space<vmem>>, %arg7: memref<1x128xf32, #tpu.memory_space<vmem>>, %arg8: memref<8x1024xf32, #tpu.memory_space<vmem>>, %arg9: memref<8x1024xf32, #tpu.memory_space<vmem>>) attributes {dimension_semantics = [#tpu.dimension_semantics<parallel>], iteration_bounds = array<i64: 2>, scalar_prefetch = 0 : i64, scratch_operands = 0 : i64, tpu.core_type = #tpu.core_type<tc>, window_params = [{transform_indices = @transform_0, window_bounds = array<i64: 8, 32>}, {pipeline_mode = #tpu.pipeline_mode<synchronous>, transform_indices = @transform_1, window_bounds = array<i64: 32, 128>}, {pipeline_mode = #tpu.pipeline_mode<synchronous>, transform_indices = @transform_2, window_bounds = array<i64: 1, 128>}, {pipeline_mode = #tpu.pipeline_mode<synchronous>, transform_indices = @transform_3, window_bounds = array<i64: 128, 128>}, {pipeline_mode = #tpu.pipeline_mode<synchronous>, transform_indices = @transform_4, window_bounds = array<i64: 1, 128>}, {pipeline_mode = #tpu.pipeline_mode<synchronous>, transform_indices = @transform_5, window_bounds = array<i64: 128, 128>}, {pipeline_mode = #tpu.pipeline_mode<synchronous>, transform_indices = @transform_6, window_bounds = array<i64: 1, 128>}, {transform_indices = @transform_7, window_bounds = array<i64: 8, 1024>}, {transform_indices = @transform_8, window_bounds = array<i64: 8, 1024>}]} {
    %c0 = arith.constant 0 : index
    %c0_0 = arith.constant 0 : index
    %0 = vector.load %arg1[%c0, %c0_0] : memref<8x32xf32, #tpu.memory_space<vmem>>, vector<8x32xf32>
    %c0_1 = arith.constant 0 : index
    %c0_2 = arith.constant 0 : index
    %1 = vector.load %arg2[%c0_1, %c0_2] : memref<32x128xf32, #tpu.memory_space<vmem>>, vector<32x128xf32>
    %cst = arith.constant dense<0.000000e+00> : vector<8x128xf32>
    %2 = tpu.matmul %0, %1, %cst {dimension_numbers = #tpu.dot_dimension_numbers<[1], [0], [0], [1], [0, 0, 1, 1], [], []>} : vector<8x32xf32>, vector<32x128xf32>, vector<8x128xf32> -> vector<8x128xf32>
    %c0_3 = arith.constant 0 : index
    %c0_4 = arith.constant 0 : index
    %3 = vector.load %arg3[%c0_3, %c0_4] : memref<1x128xf32, #tpu.memory_space<vmem>>, vector<1x128xf32>
    %4 = vector.broadcast %3 : vector<1x128xf32> to vector<8x128xf32>
    %5 = arith.addf %2, %4 : vector<8x128xf32>
    %cst_5 = arith.constant 0.000000e+00 : f32
    %6 = vector.broadcast %cst_5 : f32 to vector<8x128xf32>
    %7 = arith.maximumf %5, %6 : vector<8x128xf32>
    %c0_6 = arith.constant 0 : index
    %c0_7 = arith.constant 0 : index
    %8 = vector.load %arg4[%c0_6, %c0_7] : memref<128x128xf32, #tpu.memory_space<vmem>>, vector<128x128xf32>
    %cst_8 = arith.constant dense<0.000000e+00> : vector<8x128xf32>
    %9 = tpu.matmul %7, %8, %cst_8 {dimension_numbers = #tpu.dot_dimension_numbers<[1], [0], [0], [1], [0, 0, 1, 1], [], []>} : vector<8x128xf32>, vector<128x128xf32>, vector<8x128xf32> -> vector<8x128xf32>
    %c0_9 = arith.constant 0 : index
    %c0_10 = arith.constant 0 : index
    %10 = vector.load %arg5[%c0_9, %c0_10] : memref<1x128xf32, #tpu.memory_space<vmem>>, vector<1x128xf32>
    %11 = vector.broadcast %10 : vector<1x128xf32> to vector<8x128xf32>
    %12 = arith.addf %9, %11 : vector<8x128xf32>
    %c0_11 = arith.constant 0 : index
    %c0_12 = arith.constant 0 : index
    %13 = vector.load %arg6[%c0_11, %c0_12] : memref<128x128xf32, #tpu.memory_space<vmem>>, vector<128x128xf32>
    %cst_13 = arith.constant dense<0.000000e+00> : vector<8x128xf32>
    %14 = tpu.matmul %7, %13, %cst_13 {dimension_numbers = #tpu.dot_dimension_numbers<[1], [0], [0], [1], [0, 0, 1, 1], [], []>} : vector<8x128xf32>, vector<128x128xf32>, vector<8x128xf32> -> vector<8x128xf32>
    %c0_14 = arith.constant 0 : index
    %c0_15 = arith.constant 0 : index
    %15 = vector.load %arg7[%c0_14, %c0_15] : memref<1x128xf32, #tpu.memory_space<vmem>>, vector<1x128xf32>
    %16 = vector.broadcast %15 : vector<1x128xf32> to vector<8x128xf32>
    %17 = arith.addf %14, %16 : vector<8x128xf32>
    %cst_16 = arith.constant 5.000000e-01 : f32
    %18 = vector.broadcast %cst_16 : f32 to vector<8x128xf32>
    %19 = arith.mulf %18, %17 : vector<8x128xf32>
    %20 = math.exp %19 : vector<8x128xf32>
    %c0_17 = arith.constant 0 : index
    %c0_18 = arith.constant 0 : index
    %21 = vector.load %arg8[%c0_17, %c0_18] : memref<8x1024xf32, #tpu.memory_space<vmem>>, vector<8x128xf32>
    %22 = arith.mulf %20, %21 : vector<8x128xf32>
    %23 = arith.addf %12, %22 : vector<8x128xf32>
    %c0_19 = arith.constant 0 : index
    %c0_20 = arith.constant 0 : index
    %24 = vector.load %arg9[%c0_19, %c0_20] : memref<8x1024xf32, #tpu.memory_space<vmem>>, vector<8x128xf32>
    tpu.vector_store %arg9[%c0_19, %c0_20], %23 {strides = array<i32>} : memref<8x1024xf32, #tpu.memory_space<vmem>>, vector<8x128xf32>,
    %c0_21 = arith.constant 0 : index
    %c128 = arith.constant 128 : index
    %25 = vector.load %arg8[%c0_21, %c128] : memref<8x1024xf32, #tpu.memory_space<vmem>>, vector<8x128xf32>
    %26 = arith.mulf %20, %25 : vector<8x128xf32>
    %27 = arith.addf %12, %26 : vector<8x128xf32>
    %c0_22 = arith.constant 0 : index
    %c128_23 = arith.constant 128 : index
    %28 = vector.load %arg9[%c0_22, %c128_23] : memref<8x1024xf32, #tpu.memory_space<vmem>>, vector<8x128xf32>
    tpu.vector_store %arg9[%c0_22, %c128_23], %27 {strides = array<i32>} : memref<8x1024xf32, #tpu.memory_space<vmem>>, vector<8x128xf32>,
    %c0_24 = arith.constant 0 : index
    %c256 = arith.constant 256 : index
    %29 = vector.load %arg8[%c0_24, %c256] : memref<8x1024xf32, #tpu.memory_space<vmem>>, vector<8x128xf32>
    %30 = arith.mulf %20, %29 : vector<8x128xf32>
    %31 = arith.addf %12, %30 : vector<8x128xf32>
    %c0_25 = arith.constant 0 : index
    %c256_26 = arith.constant 256 : index
    %32 = vector.load %arg9[%c0_25, %c256_26] : memref<8x1024xf32, #tpu.memory_space<vmem>>, vector<8x128xf32>
    tpu.vector_store %arg9[%c0_25, %c256_26], %31 {strides = array<i32>} : memref<8x1024xf32, #tpu.memory_space<vmem>>, vector<8x128xf32>,
    %c0_27 = arith.constant 0 : index
    %c384 = arith.constant 384 : index
    %33 = vector.load %arg8[%c0_27, %c384] : memref<8x1024xf32, #tpu.memory_space<vmem>>, vector<8x128xf32>
    %34 = arith.mulf %20, %33 : vector<8x128xf32>
    %35 = arith.addf %12, %34 : vector<8x128xf32>
    %c0_28 = arith.constant 0 : index
    %c384_29 = arith.constant 384 : index
    %36 = vector.load %arg9[%c0_28, %c384_29] : memref<8x1024xf32, #tpu.memory_space<vmem>>, vector<8x128xf32>
    tpu.vector_store %arg9[%c0_28, %c384_29], %35 {strides = array<i32>} : memref<8x1024xf32, #tpu.memory_space<vmem>>, vector<8x128xf32>,
    %c0_30 = arith.constant 0 : index
    %c512 = arith.constant 512 : index
    %37 = vector.load %arg8[%c0_30, %c512] : memref<8x1024xf32, #tpu.memory_space<vmem>>, vector<8x128xf32>
    %38 = arith.mulf %20, %37 : vector<8x128xf32>
    %39 = arith.addf %12, %38 : vector<8x128xf32>
    %c0_31 = arith.constant 0 : index
    %c512_32 = arith.constant 512 : index
    %40 = vector.load %arg9[%c0_31, %c512_32] : memref<8x1024xf32, #tpu.memory_space<vmem>>, vector<8x128xf32>
    tpu.vector_store %arg9[%c0_31, %c512_32], %39 {strides = array<i32>} : memref<8x1024xf32, #tpu.memory_space<vmem>>, vector<8x128xf32>,
    %c0_33 = arith.constant 0 : index
    %c640 = arith.constant 640 : index
    %41 = vector.load %arg8[%c0_33, %c640] : memref<8x1024xf32, #tpu.memory_space<vmem>>, vector<8x128xf32>
    %42 = arith.mulf %20, %41 : vector<8x128xf32>
    %43 = arith.addf %12, %42 : vector<8x128xf32>
    %c0_34 = arith.constant 0 : index
    %c640_35 = arith.constant 640 : index
    %44 = vector.load %arg9[%c0_34, %c640_35] : memref<8x1024xf32, #tpu.memory_space<vmem>>, vector<8x128xf32>
    tpu.vector_store %arg9[%c0_34, %c640_35], %43 {strides = array<i32>} : memref<8x1024xf32, #tpu.memory_space<vmem>>, vector<8x128xf32>,
    %c0_36 = arith.constant 0 : index
    %c768 = arith.constant 768 : index
    %45 = vector.load %arg8[%c0_36, %c768] : memref<8x1024xf32, #tpu.memory_space<vmem>>, vector<8x128xf32>
    %46 = arith.mulf %20, %45 : vector<8x128xf32>
    %47 = arith.addf %12, %46 : vector<8x128xf32>
    %c0_37 = arith.constant 0 : index
    %c768_38 = arith.constant 768 : index
    %48 = vector.load %arg9[%c0_37, %c768_38] : memref<8x1024xf32, #tpu.memory_space<vmem>>, vector<8x128xf32>
    tpu.vector_store %arg9[%c0_37, %c768_38], %47 {strides = array<i32>} : memref<8x1024xf32, #tpu.memory_space<vmem>>, vector<8x128xf32>,
    %c0_39 = arith.constant 0 : index
    %c896 = arith.constant 896 : index
    %49 = vector.load %arg8[%c0_39, %c896] : memref<8x1024xf32, #tpu.memory_space<vmem>>, vector<8x128xf32>
    %50 = arith.mulf %20, %49 : vector<8x128xf32>
    %51 = arith.addf %12, %50 : vector<8x128xf32>
    %c0_40 = arith.constant 0 : index
    %c896_41 = arith.constant 896 : index
    %52 = vector.load %arg9[%c0_40, %c896_41] : memref<8x1024xf32, #tpu.memory_space<vmem>>, vector<8x128xf32>
    tpu.vector_store %arg9[%c0_40, %c896_41], %51 {strides = array<i32>} : memref<8x1024xf32, #tpu.memory_space<vmem>>, vector<8x128xf32>,
    return
  }
  func.func @transform_0(%arg0: i32) -> (i32, i32) {
    %c0_i32 = arith.constant 0 : i32
    %c0_i32_0 = arith.constant 0 : i32
    return %arg0, %c0_i32 : i32, i32
  }
  func.func @transform_1(%arg0: i32) -> (i32, i32) {
    %c0_i32 = arith.constant 0 : i32
    %c0_i32_0 = arith.constant 0 : i32
    %c0_i32_1 = arith.constant 0 : i32
    return %c0_i32, %c0_i32_0 : i32, i32
  }
  func.func @transform_2(%arg0: i32) -> (i32, i32) {
    %c0_i32 = arith.constant 0 : i32
    %c0_i32_0 = arith.constant 0 : i32
    %c0_i32_1 = arith.constant 0 : i32
    return %c0_i32, %c0_i32_0 : i32, i32
  }
  func.func @transform_3(%arg0: i32) -> (i32, i32) {
    %c0_i32 = arith.constant 0 : i32
    %c0_i32_0 = arith.constant 0 : i32
    %c0_i32_1 = arith.constant 0 : i32
    return %c0_i32, %c0_i32_0 : i32, i32
  }
  func.func @transform_4(%arg0: i32) -> (i32, i32) {
    %c0_i32 = arith.constant 0 : i32
    %c0_i32_0 = arith.constant 0 : i32
    %c0_i32_1 = arith.constant 0 : i32
    return %c0_i32, %c0_i32_0 : i32, i32
  }
  func.func @transform_5(%arg0: i32) -> (i32, i32) {
    %c0_i32 = arith.constant 0 : i32
    %c0_i32_0 = arith.constant 0 : i32
    %c0_i32_1 = arith.constant 0 : i32
    return %c0_i32, %c0_i32_0 : i32, i32
  }
  func.func @transform_6(%arg0: i32) -> (i32, i32) {
    %c0_i32 = arith.constant 0 : i32
    %c0_i32_0 = arith.constant 0 : i32
    %c0_i32_1 = arith.constant 0 : i32
    return %c0_i32, %c0_i32_0 : i32, i32
  }
  func.func @transform_7(%arg0: i32) -> (i32, i32) {
    %c0_i32 = arith.constant 0 : i32
    %c0_i32_0 = arith.constant 0 : i32
    return %arg0, %c0_i32 : i32, i32
  }
  func.func @transform_8(%arg0: i32) -> (i32, i32) {
    %c0_i32 = arith.constant 0 : i32
    %c0_i32_0 = arith.constant 0 : i32
    return %arg0, %c0_i32 : i32, i32
  }
}

</mosaic_0001>

<bundles_post_ra>
// kernel: gaussian_encoder_forward.1
= control target key start
LH: loop header
LB: loop body
LE: loop exit
PB: predicated region body
PF: predicated region fallthrough
CT: control target
= control target key end

     0   :  { %13 = vsyncpa [#allocation3], 0  ;;  %s1430_s0 = inlined_call_operand.hbm [shape: f32[16,32], index: 0, kind: input, shape index: {}]   ;;  %s1431_s1 = inlined_call_operand.hbm [shape: f32[32,128], index: 1, kind: input, shape index: {}]   ;;  %s1432_s2 = inlined_call_operand.vmem [shape: f32[1,128], index: 2, kind: input, shape index: {}]   ;;  %s1433_s3 = inlined_call_operand.vmem [shape: f32[128,128], index: 3, kind: input, shape index: {}]   ;;  %s1434_s4 = inlined_call_operand.vmem [shape: f32[1,128], index: 4, kind: input, shape index: {}]   ;;  %s1435_s5 = inlined_call_operand.vmem [shape: f32[128,128], index: 5, kind: input, shape index: {}]   ;;  %s1436_s6 = inlined_call_operand.vmem [shape: f32[1,128], index: 6, kind: input, shape index: {}]   ;;  %s1437_s7 = inlined_call_operand.vmem [shape: f32[16,1024], index: 7, kind: input, shape index: {}]   ;;  %s1438_s8 = inlined_call_operand.vmem [shape: f32[16,1024], index: 8, kind: output, shape index: {}]  }
   0x1   :  { %15 = vsyncpa [#allocation3 + $0x1], 0 }
   0x2   :  { %16 = vsyncpa [#allocation5], 0  ;;  %s1157_s27 = smov 0   ;;  %s1159_s28 = smov 0  }
   0x3   :  { %s1161_s29 = smov 0   ;;  %s1163_s30 = smov 0  }
   0x4 LB: > { %s1176_s9 = sadd.s32 4294967295, %s1103_s30   ;;  %p42_p0 = scmp.ne.s32.totalorder %s1095_s28, %s1091_s27  ;;  %s1103_s30 = sphi %s1163_s30, %s1453_s30   ;;  %s1099_s29 = sphi %s1161_s29, %s1452_s29   ;;  %s1095_s28 = sphi %s1159_s28, %s1451_s28   ;;  %s1091_s27 = sphi %s1157_s27, %s1450_s27  }
   0x5   : > { %p1439_p1 = scmp.eq.s32.totalorder %s1176_s9, 0  ;;  %p756_p2 = scmp.ge.s32.totalorder %s1103_s30, 1 }
   0x6   : > { %p231_p3 = scmp.lt.s32.totalorder %s1103_s30, 3  ;;  %s1105_s12 = smov [#allocation4]  }
   0x7   : > { %p1184_p4 = por %p1439_p1, %p42_p0  ;;  %s243_s13 = sshll.u32 %s1105_s12, 4  ;;  %s244_s13 = int_to_ptr.vmem [resolvable:$true] %s243_s13 }
   0x8   : > { %p1188_p5 = pnand %p756_p2, %p231_p3  ;;  %s1201_s15 = sadd.s32 1, %s1103_s30  }
   0x9   : > { %s1442_s10 = scalar_select %p1184_p4, 1, 0 }
   0xa   : > { %s1443_s11 = scalar_select %p1188_p5, 1, 0 }
   0xb   : > { %p956_p6 = pneg %p1188_p5  ;;  %s29_s16 = sadd.s32 1, %s1099_s29 }
   0xc   : > { %s26_s17 = ssub.s32 %s1103_s30, %s1201_s15  ;;  %s1007_s20 = scalar_lea.hbm %s1431_s1, 512 }
   0xd   : > { %p1196_p7 = pnand %p956_p6, %p1439_p1  ;;  %p1008_p8 = scmp.ne.s32.totalorder %s1431_s1, %s1007_s20 }
   0xe   : > { %p1014_p12 = scmp.lt.u32.totalorder %s1007_s20, %s1431_s1 }
   0xf   : > { %p1009_p9 = pneg %p1196_p7 }
  0x11   : > { %p1010_p10 = pnand %p1009_p9, %p1008_p8 }
  0x13   : > { %p1011_p11 = pneg %p1010_p10 }
  0x15   : > { %p1016_p13 = pnand %p1014_p12, %p1011_p11 }
  0x17   : > { %1019 = shalt.err (!%p1016_p13)
}
  0x18   : > { %s1020_s25 = scalar_lea.vmem %s244_s13, 512  ;;  %p1028_p6 = scmp.lt.s32.totalorder %s244_s13, %s244_s13 }
  0x19   : > { %p1021_p0 = scmp.ne.s32.totalorder %s244_s13, %s1020_s25  ;;  %p1029_p1 = scmp.lt.s32.totalorder %s1020_s25, %s1020_s25 }
  0x1b   : > { %p1023_p2 = pnand %p1021_p0, %p1009_p9  ;;  %p1030_p4 = por %p1029_p1, %p1028_p6 }
  0x1d   : > { %p1024_p3 = pneg %p1023_p2 }
  0x1f   : > { %p1031_p5 = pnand %p1030_p4, %p1024_p3 }
  0x21   : > { %1034 = shalt.err (!%p1031_p5)
}
  0x22   : > { %s1106_s26 = smov 128   ;;  %s1107_s27 = smov 8  }
  0x23   : > { %959 = dma.hbm_to_vmem [thread:$0]  (!%p1196_p7), %s1431_s1, 512, %s244_s13, [#allocation5], %s1106_s26, %s1106_s26, %s1107_s27  }
  0x24   : > { %p27_p8 = scmp.eq.s32.totalorder %s26_s17, 0  ;;  %p36_p9 = scmp.ne.s32.totalorder %s1099_s29, %s1095_s28 }
  0x25   : > { %p37_p1 = scmp.eq.s32.totalorder %s1103_s30, 0  ;;  %p965_p4 = scmp.lt.s32.totalorder %s1103_s30, 2 }
  0x26   : > { %s1227_s19 = scalar_select %p27_p8, %s1099_s29, %s29_s16  }
  0x27   : > { %p38_p5 = por %p37_p1, %p36_p9  ;;  %s272_s20 = sand.u32 1, %s1099_s29  }
  0x28   : > { %s759_s21 = sshll.u32 %s272_s20, 3  ;;  %s760_s22 = sshll.u32 %s1103_s30, 7 }
  0x29   : > { %s1234_s25 = scalar_lea.hbm %s1430_s0, %s760_s22  ;;  %s276_s13 = scalar_lea.vmem [#allocation2], %s759_s21 }
  0x2a   : > { %s283_s14 = sshll.u32 %s276_s13, 4  ;;  %p1238_p7 = pnand %p965_p4, %p38_p5  ;;  %s1236_s14 = int_to_ptr.vmem [resolvable:$true] %s283_s14 }
  0x2b   : > { %s273_s30 = scalar_lea.sflag [#allocation3], %s272_s20  ;;  %s1035_s17 = scalar_lea.hbm %s1234_s25, 128 }
  0x2c   : > { %p1036_p10 = scmp.ne.s32.totalorder %s1234_s25, %s1035_s17  ;;  %p1037_p11 = pneg %p1238_p7 }
  0x2d   : > { %s1040_s12 = scalar_lea.hbm %s1430_s0, 256  ;;  %p1041_p0 = scmp.lt.u32.totalorder %s1234_s25, %s1430_s0 }
  0x2e   : > { %p1038_p12 = pnand %p1037_p11, %p1036_p10  ;;  %p1042_p2 = scmp.lt.u32.totalorder %s1040_s12, %s1035_s17 }
  0x2f   : > { %p1044_p6 = scmp.lt.u32.totalorder %s1035_s17, %s1234_s25 }
  0x30   : > { %p1039_p13 = pneg %p1038_p12  ;;  %p1043_p3 = por %p1042_p2, %p1041_p0 }
  0x32   : > { %p1045_p8 = por %p1044_p6, %p1043_p3 }
  0x34   : > { %p1046_p9 = pnand %p1045_p8, %p1039_p13 }
  0x36   : > { %1049 = shalt.err (!%p1046_p9)
}
  0x37   : > { %s1050_s20 = scalar_lea.vmem %s1236_s14, 128  ;;  %s1108_s22 = smov [#allocation2]  }
  0x38   : > { %p1051_p1 = scmp.ne.s32.totalorder %s1236_s14, %s1050_s20  ;;  %s1055_s23 = sshll.u32 %s1108_s22, 4  ;;  %s1056_s23 = int_to_ptr.vmem [resolvable:$false] %s1055_s23 }
  0x39   : > { %s1057_s24 = scalar_lea.vmem %s1056_s23, 256  ;;  %p1058_p10 = scmp.lt.s32.totalorder %s1236_s14, %s1056_s23 }
  0x3a   : > { %p1053_p4 = pnand %p1051_p1, %p1037_p11  ;;  %p1059_p12 = scmp.lt.s32.totalorder %s1057_s24, %s1050_s20 }
  0x3c   : > { %p1054_p5 = pneg %p1053_p4  ;;  %p1060_p0 = por %p1059_p12, %p1058_p10 }
  0x3e   : > { %p1061_p2 = pnand %p1060_p0, %p1054_p5 }
  0x40   : > { %1064 = shalt.err (!%p1061_p2)
}
  0x41   : > { %963 = dma.hbm_to_vmem [thread:$0]  (!%p1238_p7), %s1234_s25, 128, %s1236_s14, %s273_s30  }
  0x42   : > { %p1446_p13 = scmp.ne.s32.totalorder %s1443_s11, 0 }
  0x43   : > { %s302_s13 = sand.u32 (!%p1446_p13), 1, %s1095_s28   ;;  %p1447_p11 = scmp.ne.s32.totalorder (!%p1446_p13), %s1442_s10, 0 }
  0x44   : > { %300 = sbr.rel (%p1446_p13) target bundleno = 542 (0x21e), region = 52  ;;  %s1270_s17 = sshll.u32 (!%p1446_p13), %s302_s13, 3 }
  0x45   : > { %s303_s26 = scalar_lea.sflag (!%p1446_p13), [#allocation3], %s302_s13  ;;  %s306_s27 = scalar_lea.vmem (!%p1446_p13), [#allocation2], %s1270_s17 }
  0x4b   : > { %1082 = dma.done.wait (%p1447_p11), %s303_s26, 128  }
  0x4c   : > { %1084 = vsyncadd (%p1447_p11), %s303_s26, 4294967168  ;;  %p1448_p3 = scmp.eq.s32.totalorder %s1176_s9, 0 }
  0x4e   : > { %1086 = dma.done.wait (%p1448_p3), [#allocation5], 512   ;;  %p1449_p7 = pmov %p1448_p3 }
  0x4f   : > { %v1109_v0 = vmov 0.0|0.0   ;;  %vm1110_vm0 = vmmov 0   ;;  %v1111_v1 = vmov 0.0   ;;  %v359_v2 = vld [vmem:[#allocation4] sm:$0xff]  ;;  %v360_v3 = vld [vmem:[#allocation4 + $0x8] sm:$0xff]  ;;  %v361_v4 = vld [vmem:[#allocation4 + $0x10] sm:$0xff] }
  0x50   : > { %1088 = vsyncadd (%p1449_p7), [#allocation5], 4294966784  ;;  %896 = vmatprep.subr.bf16.mxu0 %v1109_v0  ;;  %823 = vmatprep.mubr.msk.f32.mxu0 %vm1110_vm0, %v1111_v1  ;;  %v897_v5 = vpack.c.bf16 %v360_v3, %v359_v2  ;;  %v362_v6 = vld [vmem:[#allocation4 + $0x18] sm:$0xff]  ;;  %v445_v7 = vld [vmem:[%s1433_s3] sm:$0xff]  ;;  %vm370_vm1 = vcmask 261120   ;;  %p348_p6 = scmp.lt.s32.totalorder %s1176_s9, 1 }
  0x51   : > { %902 = vmatprep.subr.bf16.mxu1 %v1109_v0  ;;  %858 = vmatprep.mubr.msk.f32.mxu1 %vm1110_vm0, %v1111_v1  ;;  %v446_v8 = vld [vmem:[%s1433_s3 + $0x8] sm:$0xff]  ;;  %v900_v9 = vpack.c.bf16 %v362_v6, %v361_v4  ;;  %v447_v11 = vld [vmem:[%s1433_s3 + $0x10] sm:$0xff]  ;;  %v448_v12 = vld [vmem:[%s1433_s3 + $0x18] sm:$0xff] }
  0x52   : > { %898 = vmatpush3.bf16.msra.mxu0 %v897_v5  ;;  %v903_v10 = vpack.c.bf16 %v446_v8, %v445_v7  ;;  %v538_v13 = vld [vmem:[%s1435_s5] sm:$0xff]  ;;  %v539_v14 = vld [vmem:[%s1435_s5 + $0x8] sm:$0xff]  ;;  %v906_v15 = vpack.c.bf16 %v448_v12, %v447_v11  ;;  %v540_v20 = vld [vmem:[%s1435_s5 + $0x10] sm:$0xff]  ;;  %s1455_s9 = smov (!%p348_p6, %s1176_s9), 1 }
  0x53   : > { %899 = vmatprep.subr.bf16.mxu0 %v1109_v0  ;;  %v449_v16 = vld [vmem:[%s1433_s3 + $0x20] sm:$0xff]  ;;  %v450_v17 = vld [vmem:[%s1433_s3 + $0x28] sm:$0xff]  ;;  %v927_v19 = vpack.c.bf16 %v539_v14, %v538_v13  ;;  %v541_v21 = vld [vmem:[%s1435_s5 + $0x18] sm:$0xff]  ;;  %s774_s25 = sshll.u32 %s1455_s9, 6 }
  0x54   : > { %904 = vmatpush3.bf16.msra.mxu1 %v903_v10  ;;  %v358_v18 = vld [vmem:[%s306_s27] sm:$0xff]  ;;  %v909_v22 = vpack.c.bf16 %v450_v17, %v449_v16  ;;  %v451_v23 = vld [vmem:[%s1433_s3 + $0x30] sm:$0xff]  ;;  %v452_v24 = vld [vmem:[%s1433_s3 + $0x38] sm:$0xff]  ;;  %v930_v25 = vpack.c.bf16 %v541_v21, %v540_v20  ;;  %s352_s30 = scalar_lea.vmem %s1437_s7, %s774_s25  ;;  %s357_s18 = scalar_lea.vmem %s1438_s8, %s774_s25 }
  0x55   : > { %905 = vmatprep.subr.bf16.mxu1 %v1109_v0  ;;  %v542_v26 = vld [vmem:[%s1435_s5 + $0x20] sm:$0xff]  ;;  %v543_v27 = vld [vmem:[%s1435_s5 + $0x28] sm:$0xff]  ;;  %v912_v28 = vpack.c.bf16 %v452_v24, %v451_v23  ;;  %v544_v32 = vld [vmem:[%s1435_s5 + $0x30] sm:$0xff] }
  0x56   : > { %901 = vmatpush3.bf16.msra.mxu0 %v900_v9  ;;  %v453_v29 = vld [vmem:[%s1433_s3 + $0x40] sm:$0xff]  ;;  %v454_v30 = vld [vmem:[%s1433_s3 + $0x48] sm:$0xff]  ;;  %v933_v31 = vpack.c.bf16 %v543_v27, %v542_v26  ;;  %v545_v33 = vld [vmem:[%s1435_s5 + $0x38] sm:$0xff] }
  0x57   : > { %926 = vmatprep.subr.bf16.mxu0 %v1109_v0  ;;  %v915_v34 = vpack.c.bf16 %v454_v30, %v453_v29  ;;  %v455_v35 = vld [vmem:[%s1433_s3 + $0x50] sm:$0xff]  ;;  %v456_v36 = vld [vmem:[%s1433_s3 + $0x58] sm:$0xff]  ;;  %v936_v37 = vpack.c.bf16 %v545_v33, %v544_v32  ;;  %v546_v38 = vld [vmem:[%s1435_s5 + $0x40] sm:$0xff] }
  0x58   : > { %907 = vmatpush3.bf16.msra.mxu1 %v906_v15  ;;  %v547_v39 = vld [vmem:[%s1435_s5 + $0x48] sm:$0xff]  ;;  %v918_v40 = vpack.c.bf16 %v456_v36, %v455_v35  ;;  %v457_v41 = vld [vmem:[%s1433_s3 + $0x60] sm:$0xff]  ;;  %v548_v44 = vld [vmem:[%s1435_s5 + $0x50] sm:$0xff] }
  0x59   : > { %824 = vmatmul.mubr.msk.f32.vlgmr.msra.gmra.mrb[0].mxu0 %vm370_vm1, %v358_v18  ;;  %908 = vmatprep.subr.bf16.mxu1 %v1109_v0  ;;  %v458_v42 = vld [vmem:[%s1433_s3 + $0x68] sm:$0xff]  ;;  %v939_v43 = vpack.c.bf16 %v547_v39, %v546_v38  ;;  %v549_v45 = vld [vmem:[%s1435_s5 + $0x58] sm:$0xff]  ;;  %v550_v48 = vld [vmem:[%s1435_s5 + $0x60] sm:$0xff] }
  0x5a   : > { %928 = vmatpush3.bf16.msra.mxu0 %v927_v19  ;;  %893 = vmatprep.mubr.msk.f32.mxu0 %vm1110_vm0, %v1111_v1  ;;  %v921_v46 = vpack.c.bf16 %v458_v42, %v457_v41  ;;  %v942_v47 = vpack.c.bf16 %v549_v45, %v548_v44  ;;  %v551_v49 = vld [vmem:[%s1435_s5 + $0x68] sm:$0xff]  ;;  %v459_v51 = vld [vmem:[%s1433_s3 + $0x70] sm:$0xff]  ;;  %v460_v52 = vld [vmem:[%s1433_s3 + $0x78] sm:$0xff] }
  0x5b   : > { %929 = vmatprep.subr.bf16.mxu0 %v1109_v0  ;;  %v945_v50 = vpack.c.bf16 %v551_v49, %v550_v48  ;;  %v552_v53 = vld [vmem:[%s1435_s5 + $0x70] sm:$0xff]  ;;  %v924_v54 = vpack.c.bf16 %v460_v52, %v459_v51  ;;  %v553_v55 = vld [vmem:[%s1435_s5 + $0x78] sm:$0xff]  ;;  %v768_v57 = vld [vmem:[%s1432_s2] ss:$0 sm:$0xff] }
  0x5c   : > { %910 = vmatpush3.bf16.msra.mxu1 %v909_v22  ;;  %v948_v56 = vpack.c.bf16 %v553_v55, %v552_v53  ;;  %v771_v62 = vld [vmem:[%s1436_s6] ss:$0 sm:$0xff]  ;;  %v638_v8 = vld [vmem:[%s352_s30 + $0x8] sm:$0xff]  ;;  %v642_v9 = vld [vmem:[%s352_s30 + $0x10] sm:$0xff] }
  0x5d   : > { %911 = vmatprep.subr.bf16.mxu1 %v1109_v0  ;;  %v770_v6 = vld [vmem:[%s1434_s4] ss:$0 sm:$0xff]  ;;  %v646_v10 = vld [vmem:[%s352_s30 + $0x18] sm:$0xff]  ;;  %v654_v12 = vld [vmem:[%s352_s30 + $0x28] sm:$0xff] }
  0x5e   : > { %931 = vmatpush3.bf16.msra.mxu0 %v930_v25  ;;  %v634_v7 = vld [vmem:[%s352_s30] sm:$0xff]  ;;  %v658_v13 = vld [vmem:[%s352_s30 + $0x30] sm:$0xff]  ;;  %v662_v14 = vld [vmem:[%s352_s30 + $0x38] sm:$0xff] }
  0x5f   : > { %932 = vmatprep.subr.bf16.mxu0 %v1109_v0  ;;  %v650_v11 = vld [vmem:[%s352_s30 + $0x20] sm:$0xff] }
  0x60   : > { %913 = vmatpush3.bf16.msra.mxu1 %v912_v28 }
  0x61   : > { %914 = vmatprep.subr.bf16.mxu1 %v1109_v0 }
  0x62   : > { %934 = vmatpush3.bf16.msra.mxu0 %v933_v31 }
  0x63   : > { %935 = vmatprep.subr.bf16.mxu0 %v1109_v0 }
  0x64   : > { %916 = vmatpush3.bf16.msra.mxu1 %v915_v34 }
  0x65   : > { %917 = vmatprep.subr.bf16.mxu1 %v1109_v0 }
  0x66   : > { %937 = vmatpush3.bf16.msra.mxu0 %v936_v37 }
  0x67   : > { %938 = vmatprep.subr.bf16.mxu0 %v1109_v0 }
  0x68   : > { %919 = vmatpush3.bf16.msra.mxu1 %v918_v40 }
  0x69   : > { %920 = vmatprep.subr.bf16.mxu1 %v1109_v0 }
  0x6a   : > { %940 = vmatpush3.bf16.msra.mxu0 %v939_v43 }
  0x6b   : > { %941 = vmatprep.subr.bf16.mxu0 %v1109_v0 }
  0x6c   : > { %922 = vmatpush3.bf16.msra.mxu1 %v921_v46 }
  0x6d   : > { %923 = vmatprep.subr.bf16.mxu1 %v1109_v0 }
  0x6e   : > { %943 = vmatpush3.bf16.msra.mxu0 %v942_v47 }
  0x6f   : > { %944 = vmatprep.subr.bf16.mxu0 %v1109_v0 }
  0x70   : > { %925 = vmatpush3.bf16.msra.mxu1 %v924_v54 }
  0x72   : > { %946 = vmatpush3.bf16.msra.mxu0 %v945_v50 }
  0x73   : > { %947 = vmatprep.subr.bf16.mxu0 %v1109_v0 }
  0x76   : > { %949 = vmatpush3.bf16.msra.mxu0 %v948_v56 }
 0x12c   : > { %v440_v58 = vpop.f32.mrb[0].mxu0 }
 0x12d   : > { %v441_v59 = vadd.f32 %v768_v57, %v440_v58  ;;  %v825_v60 = vpop.f32.mrb[1].mxu0 }
 0x12f   : > { %v444_v61 = vmax.f32 %v441_v59, 0.0 }
 0x131   : > { %859 = vmatmul.mubr.f32.vlgmr.msra.gmra.mrb[0].mxu1 %v444_v61  ;;  %894 = vmatmul.mubr.f32.vlgmr.msra.gmra.mrb[2].mxu0 %v444_v61 }
 0x204   : > { %v534_v63 = vpop.f32.mrb[0].mxu1  ;;  %v627_v0 = vpop.f32.mrb[2].mxu0 }
 0x205   : > { %v628_v1 = vadd.f32 %v771_v62, %v627_v0  ;;  %v860_v2 = vpop.f32.mrb[1].mxu1  ;;  %v895_v3 = vpop.f32.mrb[3].mxu0  ;;  %v535_v16 = vadd.f32 %v770_v6, %v534_v63 }
 0x207   : > { %v631_v4 = vmul.f32 0.5, %v628_v1 }
 0x209   : > { %v632_v5 = vmul.f32 1.442695, %v631_v4 }
 0x20b   : > { %1005 = vpow2.f32 %v632_v5 }
 0x215   : > { %v1006_v15 = vpop.eup %1005 }
 0x216   : > { %v635_v17 = vmul.f32 %v1006_v15, %v634_v7  ;;  %v639_v18 = vmul.f32 %v1006_v15, %v638_v8  ;;  %v643_v19 = vmul.f32 %v1006_v15, %v642_v9  ;;  %v647_v20 = vmul.f32 %v1006_v15, %v646_v10 }
 0x217   : > { %v651_v21 = vmul.f32 %v1006_v15, %v650_v11  ;;  %v655_v22 = vmul.f32 %v1006_v15, %v654_v12  ;;  %v659_v23 = vmul.f32 %v1006_v15, %v658_v13  ;;  %v663_v24 = vmul.f32 %v1006_v15, %v662_v14 }
 0x218   : > { %v636_v25 = vadd.f32 %v635_v17, %v535_v16  ;;  %v640_v26 = vadd.f32 %v639_v18, %v535_v16  ;;  %v644_v27 = vadd.f32 %v643_v19, %v535_v16  ;;  %v648_v28 = vadd.f32 %v647_v20, %v535_v16 }
 0x219   : > { %v652_v29 = vadd.f32 %v651_v21, %v535_v16  ;;  %v656_v30 = vadd.f32 %v655_v22, %v535_v16  ;;  %v660_v31 = vadd.f32 %v659_v23, %v535_v16  ;;  %v664_v32 = vadd.f32 %v663_v24, %v535_v16 }
 0x21a   : > { %637 = vst [vmem:[%s357_s18] sm:$0xff] %v636_v25  ;;  %641 = vst [vmem:[%s357_s18 + $0x8] sm:$0xff] %v640_v26 }
 0x21b   : > { %645 = vst [vmem:[%s357_s18 + $0x10] sm:$0xff] %v644_v27  ;;  %649 = vst [vmem:[%s357_s18 + $0x18] sm:$0xff] %v648_v28 }
 0x21c   : > { %653 = vst [vmem:[%s357_s18 + $0x20] sm:$0xff] %v652_v29  ;;  %657 = vst [vmem:[%s357_s18 + $0x28] sm:$0xff] %v656_v30 }
 0x21d   : > { %661 = vst [vmem:[%s357_s18 + $0x30] sm:$0xff] %v660_v31  ;;  %665 = vst [vmem:[%s357_s18 + $0x38] sm:$0xff] %v664_v32 }
 0x21e PF: > { %p19_p8 = scmp.ge.s32.totalorder %s1201_s15, 4   ;;  %s1450_s27 = smov %s1095_s28 }
 0x21f   : > { %s1451_s28 = smov %s1099_s29  ;;  %s1452_s29 = smov %s1227_s19 }
 0x220   : > { %s1453_s30 = smov %s1201_s15  ;;  %21 = sbr.rel (!%p19_p8) target bundleno = 4 (0x4), region = 99 }
 0x227   :  { %687 = vsyncpa [#allocation3], 1 }
 0x228   :  { %689 = vsyncpa [#allocation3 + $0x1], 1 }
 0x229   :  { %690 = vsyncpa [#allocation5], 1 }

</bundles_post_ra>
